<compile_context>
chip_gen: v7x
topology: tpu7x:2x2x1
jax: 0.10.0
libtpu: 0.0.40
codegen_flags: <defaults>
</compile_context>

<pallas_src>
import functools

import jax
import jax.numpy as jnp
from jax.experimental import pallas as pl
from jax.experimental.pallas import tpu as pltpu


def _round_up(x, m):
    return (x + m - 1) // m * m


def _mlp_fused_kernel(*refs, num_layers, sigmoid_output):
    """refs = (x_ref, w0, b0, w1, b1, ..., w_{L-1}, b_{L-1}, o_ref).

    x_ref: (TM, in_dim) f32 tile (streamed).  w_i: (k_i, out_pad_i) bf16
    (VMEM-resident).  b_i: (1, out_pad_i) f32.  o_ref: (TM, N_pad) bf16.
    """
    x_ref = refs[0]
    o_ref = refs[-1]
    wb_refs = refs[1:-1]

    y = x_ref[...].astype(jnp.bfloat16)  # cast in-kernel; stream raw f32 from HBM
    for i in range(num_layers):
        w = wb_refs[2 * i][...]
        b = wb_refs[2 * i + 1][...]
        acc = jnp.dot(y, w, preferred_element_type=jnp.float32) + b  # f32 accum
        if i < num_layers - 1:
            y = jnp.maximum(acc, 0.0).astype(jnp.bfloat16)  # ReLU, back to bf16
        else:
            if sigmoid_output:
                acc = jax.nn.sigmoid(acc)
            o_ref[...] = acc.astype(o_ref.dtype)


def _pick_row_tile(M, tile_m):
    """Row tile: big (amortize per-step overhead) but >=4 tiles when M allows
    (balanced megacore sharding on v7x), multiple of 16 (bf16 sublanes)."""
    if M <= 256:
        return _round_up(M, 16)
    tm = min(tile_m, _round_up(pl.cdiv(M, 4), 128))
    return max(_round_up(tm, 16), 128)


@functools.partial(jax.jit, static_argnames=("sigmoid_output", "tile_m"))
def mlp_block_forward(x, params, sigmoid_output=False, tile_m=1024):
    """Fused Pallas implementation of MLPBlock.forward.

    x: (..., input_dim) float32.  params: list of (w, b) with nn.Linear layout
    (w: (out, in), b: (out,)).
    """
    num_layers = len(params)
    leading = x.shape[:-1]
    in_dim = x.shape[-1]
    out_dim = params[-1][0].shape[0]

    x2d = x.reshape(-1, in_dim)
    M = x2d.shape[0]

    # --- Pad / transpose / cast weights ONCE (tiny, VMEM-resident). ---------
    # First layer: K is the *unpadded* in_dim (x is not feature-padded).
    # Later layers: K is the previous layer's padded output width.
    flat_wb = []
    prev_out_pad = in_dim
    for (w, b) in params:
        o, k = w.shape
        k_pad = prev_out_pad  # = k for layer 0, padded hidden width afterwards
        o_pad = _round_up(o, 128)
        w_t = jnp.zeros((k_pad, o_pad), jnp.bfloat16)
        w_t = w_t.at[:k, :o].set(w.T.astype(jnp.bfloat16))
        b_p = jnp.zeros((1, o_pad), jnp.float32)
        b_p = b_p.at[0, :o].set(b.astype(jnp.float32))
        flat_wb += [w_t, b_p]
        prev_out_pad = o_pad

    N_pad = flat_wb[-2].shape[1]  # padded output feature dim (multiple of 128)

    # --- Row tiling: no M padding; Pallas masks the partial last block. -----
    TM = _pick_row_tile(M, tile_m)
    grid = (pl.cdiv(M, TM),)

    in_specs = [pl.BlockSpec((TM, in_dim), lambda i: (i, 0))]  # streamed x tiles
    for arr in flat_wb:                                        # VMEM-resident params
        in_specs.append(pl.BlockSpec(arr.shape, lambda i: (0, 0)))
    # Lane-dense bf16 output (N_pad % 128 == 0) -> unmasked vst, half the writeback.
    out_spec = pl.BlockSpec((TM, N_pad), lambda i: (i, 0))

    kernel = functools.partial(
        _mlp_fused_kernel, num_layers=num_layers, sigmoid_output=sigmoid_output
    )

    out_pad = pl.pallas_call(
        kernel,
        out_shape=jax.ShapeDtypeStruct((M, N_pad), jnp.bfloat16),
        grid=grid,
        in_specs=in_specs,
        out_specs=out_spec,
        compiler_params=pltpu.CompilerParams(
            dimension_semantics=("parallel",),  # shard row tiles across TCs on v7x
        ),
    )(x2d, *flat_wb)

    # Column slice + cast back to f32 fuse into this jit (no standalone HBM pass).
    out = out_pad[:, :out_dim].astype(x.dtype)
    return out.reshape(*leading, out_dim)


def init_mlp_params(key, input_dim, hidden_dim, output_dim, num_layers):
    """Deterministic init matching nn.Linear shapes (weight: (out, in), bias: (out,))."""
    h = [hidden_dim] * (num_layers - 1)
    in_dims = [input_dim] + h
    out_dims = h + [output_dim]
    params = []
    for n, k_out in zip(in_dims, out_dims):
        key, kw, kb = jax.random.split(key, 3)
        bound = 1.0 / (n ** 0.5)  # same scale as PyTorch's default Linear init
        w = jax.random.uniform(kw, (k_out, n), jnp.float32, -bound, bound)
        b = jax.random.uniform(kb, (k_out,), jnp.float32, -bound, bound)
        params.append((w, b))
    return params


def mlp_block_reference(x, params, sigmoid_output=False):
    """Pure-JAX f32 reference mirroring the PyTorch forward."""
    num_layers = len(params)
    for i, (w, b) in enumerate(params):
        y = x @ w.T + b
        if i < num_layers - 1:
            x = jax.nn.relu(y)
        else:
            x = y
    if sigmoid_output:
        x = jax.nn.sigmoid(x)
    return x


if __name__ == "__main__":
    input_dim, hidden_dim, output_dim, num_layers = 32, 32, 16, 3

    key = jax.random.PRNGKey(0)
    key, kx1, kx2 = jax.random.split(key, 3)
    params = init_mlp_params(key, input_dim, hidden_dim, output_dim, num_layers)

    # Test 1: small M (single row-tile), sigmoid output on.
    x1 = jax.random.normal(kx1, (2, 8, input_dim), jnp.float32)  # (batch, seq, dim)
    out1 = jax.block_until_ready(mlp_block_forward(x1, params, sigmoid_output=True))
    ref1 = mlp_block_reference(x1, params, sigmoid_output=True)
    assert out1.shape == (2, 8, output_dim), out1.shape
    # bf16 matmul inputs/activations/output with f32 accumulation -> loose tol vs f32 ref.
    assert jnp.allclose(out1, ref1, atol=3e-2, rtol=2e-2), (
        float(jnp.max(jnp.abs(out1 - ref1)))
    )

    # Test 2: larger M (multi-tile grid + masked partial last block), no sigmoid.
    x2 = jax.random.normal(kx2, (4, 200, input_dim), jnp.float32)
    out2 = jax.block_until_ready(mlp_block_forward(x2, params, sigmoid_output=False))
    ref2 = mlp_block_reference(x2, params, sigmoid_output=False)
    assert out2.shape == (4, 200, output_dim), out2.shape
    assert jnp.allclose(out2, ref2, atol=3e-2, rtol=2e-2), (
        float(jnp.max(jnp.abs(out2 - ref2)))
    )

    print("KERNEL_OK")
</pallas_src>

<mosaic_0001>
module attributes {stable_mosaic.version = 11 : i64} {
  func.func @_mlp_fused_kernel(%arg0: i32, %arg1: memref<16x32xf32, #tpu.memory_space<vmem>>, %arg2: memref<32x128xbf16, #tpu.memory_space<vmem>>, %arg3: memref<1x128xf32, #tpu.memory_space<vmem>>, %arg4: memref<128x128xbf16, #tpu.memory_space<vmem>>, %arg5: memref<1x128xf32, #tpu.memory_space<vmem>>, %arg6: memref<128x128xbf16, #tpu.memory_space<vmem>>, %arg7: memref<1x128xf32, #tpu.memory_space<vmem>>, %arg8: memref<16x128xbf16, #tpu.memory_space<vmem>>) attributes {dimension_semantics = [#tpu.dimension_semantics<parallel>], iteration_bounds = array<i64: 1>, scalar_prefetch = 0 : i64, scratch_operands = 0 : i64, tpu.core_type = #tpu.core_type<tc>, window_params = [{transform_indices = @transform_0, window_bounds = array<i64: 16, 32>}, {pipeline_mode = #tpu.pipeline_mode<synchronous>, transform_indices = @transform_1, window_bounds = array<i64: 32, 128>}, {pipeline_mode = #tpu.pipeline_mode<synchronous>, transform_indices = @transform_2, window_bounds = array<i64: 1, 128>}, {pipeline_mode = #tpu.pipeline_mode<synchronous>, transform_indices = @transform_3, window_bounds = array<i64: 128, 128>}, {pipeline_mode = #tpu.pipeline_mode<synchronous>, transform_indices = @transform_4, window_bounds = array<i64: 1, 128>}, {pipeline_mode = #tpu.pipeline_mode<synchronous>, transform_indices = @transform_5, window_bounds = array<i64: 128, 128>}, {pipeline_mode = #tpu.pipeline_mode<synchronous>, transform_indices = @transform_6, window_bounds = array<i64: 1, 128>}, {transform_indices = @transform_7, window_bounds = array<i64: 16, 128>}]} {
    %c0 = arith.constant 0 : index
    %c0_0 = arith.constant 0 : index
    %0 = vector.load %arg1[%c0, %c0_0] : memref<16x32xf32, #tpu.memory_space<vmem>>, vector<16x32xf32>
    %1 = arith.truncf %0 : vector<16x32xf32> to vector<16x32xbf16>
    %c0_1 = arith.constant 0 : index
    %c0_2 = arith.constant 0 : index
    %2 = vector.load %arg2[%c0_1, %c0_2] : memref<32x128xbf16, #tpu.memory_space<vmem>>, vector<32x128xbf16>
    %c0_3 = arith.constant 0 : index
    %c0_4 = arith.constant 0 : index
    %3 = vector.load %arg3[%c0_3, %c0_4] : memref<1x128xf32, #tpu.memory_space<vmem>>, vector<1x128xf32>
    %cst = arith.constant dense<0.000000e+00> : vector<16x128xf32>
    %4 = tpu.matmul %1, %2, %cst {dimension_numbers = #tpu.dot_dimension_numbers<[1], [0], [0], [1], [0, 0, 1, 1], [], []>} : vector<16x32xbf16>, vector<32x128xbf16>, vector<16x128xf32> -> vector<16x128xf32>
    %5 = vector.broadcast %3 : vector<1x128xf32> to vector<16x128xf32>
    %6 = arith.addf %4, %5 : vector<16x128xf32>
    %cst_5 = arith.constant 0.000000e+00 : f32
    %7 = vector.broadcast %cst_5 : f32 to vector<16x128xf32>
    %8 = arith.maximumf %6, %7 : vector<16x128xf32>
    %9 = arith.truncf %8 : vector<16x128xf32> to vector<16x128xbf16>
    %c0_6 = arith.constant 0 : index
    %c0_7 = arith.constant 0 : index
    %10 = vector.load %arg4[%c0_6, %c0_7] : memref<128x128xbf16, #tpu.memory_space<vmem>>, vector<128x128xbf16>
    %c0_8 = arith.constant 0 : index
    %c0_9 = arith.constant 0 : index
    %11 = vector.load %arg5[%c0_8, %c0_9] : memref<1x128xf32, #tpu.memory_space<vmem>>, vector<1x128xf32>
    %cst_10 = arith.constant dense<0.000000e+00> : vector<16x128xf32>
    %12 = tpu.matmul %9, %10, %cst_10 {dimension_numbers = #tpu.dot_dimension_numbers<[1], [0], [0], [1], [0, 0, 1, 1], [], []>} : vector<16x128xbf16>, vector<128x128xbf16>, vector<16x128xf32> -> vector<16x128xf32>
    %13 = vector.broadcast %11 : vector<1x128xf32> to vector<16x128xf32>
    %14 = arith.addf %12, %13 : vector<16x128xf32>
    %cst_11 = arith.constant 0.000000e+00 : f32
    %15 = vector.broadcast %cst_11 : f32 to vector<16x128xf32>
    %16 = arith.maximumf %14, %15 : vector<16x128xf32>
    %17 = arith.truncf %16 : vector<16x128xf32> to vector<16x128xbf16>
    %c0_12 = arith.constant 0 : index
    %c0_13 = arith.constant 0 : index
    %18 = vector.load %arg6[%c0_12, %c0_13] : memref<128x128xbf16, #tpu.memory_space<vmem>>, vector<128x128xbf16>
    %c0_14 = arith.constant 0 : index
    %c0_15 = arith.constant 0 : index
    %19 = vector.load %arg7[%c0_14, %c0_15] : memref<1x128xf32, #tpu.memory_space<vmem>>, vector<1x128xf32>
    %cst_16 = arith.constant dense<0.000000e+00> : vector<16x128xf32>
    %20 = tpu.matmul %17, %18, %cst_16 {dimension_numbers = #tpu.dot_dimension_numbers<[1], [0], [0], [1], [0, 0, 1, 1], [], []>} : vector<16x128xbf16>, vector<128x128xbf16>, vector<16x128xf32> -> vector<16x128xf32>
    %21 = vector.broadcast %19 : vector<1x128xf32> to vector<16x128xf32>
    %22 = arith.addf %20, %21 : vector<16x128xf32>
    %23 = arith.negf %22 : vector<16x128xf32>
    %24 = math.exp %23 : vector<16x128xf32>
    %cst_17 = arith.constant 1.000000e+00 : f32
    %25 = vector.broadcast %cst_17 : f32 to vector<16x128xf32>
    %26 = arith.addf %25, %24 : vector<16x128xf32>
    %27 = arith.divf %25, %26 : vector<16x128xf32>
    %28 = arith.truncf %27 : vector<16x128xf32> to vector<16x128xbf16>
    %c0_18 = arith.constant 0 : index
    %c0_19 = arith.constant 0 : index
    %29 = vector.load %arg8[%c0_18, %c0_19] : memref<16x128xbf16, #tpu.memory_space<vmem>>, vector<16x128xbf16>
    tpu.vector_store %arg8[%c0_18, %c0_19], %28 {strides = array<i32>} : memref<16x128xbf16, #tpu.memory_space<vmem>>, vector<16x128xbf16>,
    return
  }
  func.func @transform_0(%arg0: i32) -> (i32, i32) {
    %c0_i32 = arith.constant 0 : i32
    %c0_i32_0 = arith.constant 0 : i32
    return %arg0, %c0_i32 : i32, i32
  }
  func.func @transform_1(%arg0: i32) -> (i32, i32) {
    %c0_i32 = arith.constant 0 : i32
    %c0_i32_0 = arith.constant 0 : i32
    %c0_i32_1 = arith.constant 0 : i32
    return %c0_i32, %c0_i32_0 : i32, i32
  }
  func.func @transform_2(%arg0: i32) -> (i32, i32) {
    %c0_i32 = arith.constant 0 : i32
    %c0_i32_0 = arith.constant 0 : i32
    %c0_i32_1 = arith.constant 0 : i32
    return %c0_i32, %c0_i32_0 : i32, i32
  }
  func.func @transform_3(%arg0: i32) -> (i32, i32) {
    %c0_i32 = arith.constant 0 : i32
    %c0_i32_0 = arith.constant 0 : i32
    %c0_i32_1 = arith.constant 0 : i32
    return %c0_i32, %c0_i32_0 : i32, i32
  }
  func.func @transform_4(%arg0: i32) -> (i32, i32) {
    %c0_i32 = arith.constant 0 : i32
    %c0_i32_0 = arith.constant 0 : i32
    %c0_i32_1 = arith.constant 0 : i32
    return %c0_i32, %c0_i32_0 : i32, i32
  }
  func.func @transform_5(%arg0: i32) -> (i32, i32) {
    %c0_i32 = arith.constant 0 : i32
    %c0_i32_0 = arith.constant 0 : i32
    %c0_i32_1 = arith.constant 0 : i32
    return %c0_i32, %c0_i32_0 : i32, i32
  }
  func.func @transform_6(%arg0: i32) -> (i32, i32) {
    %c0_i32 = arith.constant 0 : i32
    %c0_i32_0 = arith.constant 0 : i32
    %c0_i32_1 = arith.constant 0 : i32
    return %c0_i32, %c0_i32_0 : i32, i32
  }
  func.func @transform_7(%arg0: i32) -> (i32, i32) {
    %c0_i32 = arith.constant 0 : i32
    %c0_i32_0 = arith.constant 0 : i32
    return %arg0, %c0_i32 : i32, i32
  }
}

</mosaic_0001>

<bundles_post_ra>
// kernel: mlp_block_forward.1
= control target key start
LH: loop header
LB: loop body
LE: loop exit
PB: predicated region body
PF: predicated region fallthrough
CT: control target
= control target key end

     0   :  { %v484_v0 = vmov 0.0   ;;  %vm485_vm0 = vmmov 0   ;;  %vm53_vm1 = vcmask 261120   ;;  %s622_s1 = inlined_call_operand.vmem [shape: bf16[32,128], index: 1, kind: input, shape index: {}]   ;;  %s623_s0 = inlined_call_operand.vmem [shape: f32[16,32], index: 0, kind: input, shape index: {}]   ;;  %s624_s3 = inlined_call_operand.vmem [shape: bf16[128,128], index: 3, kind: input, shape index: {}]   ;;  %s625_s5 = inlined_call_operand.vmem [shape: bf16[128,128], index: 5, kind: input, shape index: {}]   ;;  %s626_s2 = inlined_call_operand.vmem [shape: f32[1,128], index: 2, kind: input, shape index: {}]   ;;  %s627_s4 = inlined_call_operand.vmem [shape: f32[1,128], index: 4, kind: input, shape index: {}]   ;;  %s628_s6 = inlined_call_operand.vmem [shape: f32[1,128], index: 6, kind: input, shape index: {}]   ;;  %s629_s7 = inlined_call_operand.vmem [shape: bf16[16,128], index: 7, kind: output, shape index: {}]  }
   0x1   :  { %408 = vmatprep.subr.bf16.mxu0 %v484_v0  ;;  %v458_v1 = vld [vmem:[%s622_s1] sm:$0xff]   ;;  %412 = vmatprep.mubr.msk.bf16.mxu0 %vm485_vm0, %v484_v0  ;;  %v459_v2 = vld [vmem:[%s622_s1 + $0x8] sm:$0xff]   ;;  %v462_v8 = vld [vmem:[%s624_s3 + $0x10] sm:$0xff]  }
   0x2   :  { %416 = vmatprep.subr.bf16.mxu1 %v484_v0  ;;  %432 = vmatprep.mubr.msk.bf16.mxu1 %vm485_vm0, %v484_v0  ;;  %v27_v3 = vld [vmem:[%s623_s0] sm:$0xff]  ;;  %v28_v4 = vld [vmem:[%s623_s0 + $0x8] sm:$0xff]  ;;  %v463_v9 = vld [vmem:[%s624_s3 + $0x18] sm:$0xff]  }
   0x3   :  { %409 = vmatpush3.bf16.msra.mxu0 %v458_v1  ;;  %v460_v5 = vld [vmem:[%s624_s3] sm:$0xff]   ;;  %v29_v6 = vpack.c.bf16 %v28_v4, %v27_v3  ;;  %v461_v7 = vld [vmem:[%s624_s3 + $0x8] sm:$0xff]   ;;  %v466_v12 = vld [vmem:[%s624_s3 + $0x30] sm:$0xff]  }
   0x4   :  { %410 = vmatprep.subr.bf16.mxu0 %v484_v0  ;;  %417 = vmatpush3.bf16.msra.mxu1 %v460_v5  ;;  %v464_v10 = vld [vmem:[%s624_s3 + $0x20] sm:$0xff]   ;;  %v465_v11 = vld [vmem:[%s624_s3 + $0x28] sm:$0xff]   ;;  %v467_v13 = vld [vmem:[%s624_s3 + $0x38] sm:$0xff]  }
   0x5   :  { %418 = vmatprep.subr.bf16.mxu1 %v484_v0  ;;  %v468_v14 = vld [vmem:[%s625_s5] sm:$0xff]   ;;  %v469_v15 = vld [vmem:[%s625_s5 + $0x8] sm:$0xff]   ;;  %v470_v16 = vld [vmem:[%s625_s5 + $0x10] sm:$0xff]  }
   0x6   :  { %v471_v17 = vld [vmem:[%s625_s5 + $0x18] sm:$0xff]   ;;  %v472_v18 = vld [vmem:[%s625_s5 + $0x20] sm:$0xff]   ;;  %v473_v19 = vld [vmem:[%s625_s5 + $0x28] sm:$0xff]  }
   0x7   :  { %411 = vmatpush3.bf16.msra.mxu0 %v459_v2  ;;  %v354_v20 = vld [vmem:[%s626_s2] ss:$0 sm:$0xff]  ;;  %v474_v30 = vld [vmem:[%s625_s5 + $0x30] sm:$0xff]   ;;  %v475_v31 = vld [vmem:[%s625_s5 + $0x38] sm:$0xff]  }
   0x8   :  { %436 = vmatprep.subr.bf16.mxu0 %v484_v0  ;;  %419 = vmatpush3.bf16.msra.mxu1 %v461_v7  ;;  %v358_v32 = vld [vmem:[%s627_s4] ss:$0 sm:$0xff] }
   0x9   :  { %420 = vmatprep.subr.bf16.mxu1 %v484_v0  ;;  %v367_v42 = vld [vmem:[%s628_s6] ss:$0 sm:$0xff] }
   0xa   :  { %413 = vmatmul.mubr.msk.bf16.vlgmr.msra.gmra.mrb[0].mxu0 %vm53_vm1, %v29_v6 }
   0xb   :  { %452 = vmatprep.mubr.msk.bf16.mxu0 %vm485_vm0, %v484_v0  ;;  %437 = vmatpush3.bf16.msra.mxu0 %v468_v14 }
   0xc   :  { %421 = vmatpush3.bf16.msra.mxu1 %v462_v8  ;;  %438 = vmatprep.subr.bf16.mxu0 %v484_v0 }
   0xd   :  { %422 = vmatprep.subr.bf16.mxu1 %v484_v0 }
   0xf   :  { %439 = vmatpush3.bf16.msra.mxu0 %v469_v15 }
  0x10   :  { %423 = vmatpush3.bf16.msra.mxu1 %v463_v9  ;;  %440 = vmatprep.subr.bf16.mxu0 %v484_v0 }
  0x11   :  { %424 = vmatprep.subr.bf16.mxu1 %v484_v0 }
  0x13   :  { %441 = vmatpush3.bf16.msra.mxu0 %v470_v16 }
  0x14   :  { %425 = vmatpush3.bf16.msra.mxu1 %v464_v10  ;;  %442 = vmatprep.subr.bf16.mxu0 %v484_v0 }
  0x15   :  { %426 = vmatprep.subr.bf16.mxu1 %v484_v0 }
  0x17   :  { %443 = vmatpush3.bf16.msra.mxu0 %v471_v17 }
  0x18   :  { %427 = vmatpush3.bf16.msra.mxu1 %v465_v11  ;;  %444 = vmatprep.subr.bf16.mxu0 %v484_v0 }
  0x19   :  { %428 = vmatprep.subr.bf16.mxu1 %v484_v0 }
  0x1b   :  { %445 = vmatpush3.bf16.msra.mxu0 %v472_v18 }
  0x1c   :  { %429 = vmatpush3.bf16.msra.mxu1 %v466_v12  ;;  %446 = vmatprep.subr.bf16.mxu0 %v484_v0 }
  0x1d   :  { %430 = vmatprep.subr.bf16.mxu1 %v484_v0 }
  0x1f   :  { %447 = vmatpush3.bf16.msra.mxu0 %v473_v19 }
  0x20   :  { %431 = vmatpush3.bf16.msra.mxu1 %v467_v13  ;;  %448 = vmatprep.subr.bf16.mxu0 %v484_v0 }
  0x23   :  { %449 = vmatpush3.bf16.msra.mxu0 %v474_v30 }
  0x24   :  { %450 = vmatprep.subr.bf16.mxu0 %v484_v0 }
  0x27   :  { %451 = vmatpush3.bf16.msra.mxu0 %v475_v31 }
  0xdd   :  { %v91_v21 = vpop.f32.mrb[0].mxu0 }
  0xde   :  { %v92_v22 = vadd.f32 %v354_v20, %v91_v21  ;;  %v414_v23 = vpop.f32.mrb[1].mxu0 }
  0xdf   :  { %v94_v24 = vpop.f32.mrb[2].mxu0 }
  0xe0   :  { %v95_v25 = vadd.f32 %v354_v20, %v94_v24  ;;  %v415_v26 = vpop.f32.mrb[3].mxu0  ;;  %v98_v27 = vmax.f32 %v92_v22, 0.0 }
  0xe2   :  { %v99_v28 = vmax.f32 %v95_v25, 0.0 }
  0xe4   :  { %v100_v29 = vpack.c.bf16 %v99_v28, %v98_v27 }
  0xe6   :  { %433 = vmatmul.mubr.bf16.vlgmr.msra.gmra.mrb[0].mxu1 %v100_v29 }
 0x1b9   :  { %v206_v33 = vpop.f32.mrb[0].mxu1 }
 0x1ba   :  { %v207_v34 = vadd.f32 %v358_v32, %v206_v33  ;;  %v434_v35 = vpop.f32.mrb[1].mxu1 }
 0x1bb   :  { %v209_v36 = vpop.f32.mrb[2].mxu1 }
 0x1bc   :  { %v210_v37 = vadd.f32 %v358_v32, %v209_v36  ;;  %v435_v38 = vpop.f32.mrb[3].mxu1  ;;  %v213_v39 = vmax.f32 %v207_v34, 0.0 }
 0x1be   :  { %v214_v40 = vmax.f32 %v210_v37, 0.0 }
 0x1c0   :  { %v215_v41 = vpack.c.bf16 %v214_v40, %v213_v39 }
 0x1c2   :  { %453 = vmatmul.mubr.bf16.vlgmr.msra.gmra.mrb[4].mxu0 %v215_v41 }
 0x295   :  { %v321_v43 = vpop.f32.mrb[4].mxu0 }
 0x296   :  { %v322_v44 = vadd.f32 %v367_v42, %v321_v43  ;;  %v454_v45 = vpop.f32.mrb[5].mxu0 }
 0x297   :  { %v324_v46 = vpop.f32.mrb[6].mxu0 }
 0x298   :  { %v376_v47 = vmul.f32 -1.442695, %v322_v44  ;;  %v325_v48 = vadd.f32 %v367_v42, %v324_v46  ;;  %v455_v49 = vpop.f32.mrb[7].mxu0 }
 0x29a   :  { %476 = vpow2.f32 %v376_v47  ;;  %v377_v50 = vmul.f32 -1.442695, %v325_v48 }
 0x29c   :  { %478 = vpow2.f32 %v377_v50 }
 0x2a4   :  { %v477_v51 = vpop.eup %476 }
 0x2a5   :  { %v334_v52 = vadd.f32 1.0, %v477_v51 }
 0x2a6   :  { %v479_v53 = vpop.eup %478 }
 0x2a7   :  { %v335_v54 = vadd.f32 1.0, %v479_v53  ;;  %480 = vrcp.f32 %v334_v52 }
 0x2a9   :  { %482 = vrcp.f32 %v335_v54 }
 0x2b1   :  { %v481_v55 = vpop.eup %480 }
 0x2b3   :  { %v483_v56 = vpop.eup %482 }
 0x2b4   :  { %v385_v57 = vpack.c.bf16 %v483_v56, %v481_v55 }
 0x2b6   :  { %386 = vst [vmem:[%s629_s7] sm:$0xff] %v385_v57  }

</bundles_post_ra>
